<compile_context>
chip_gen: v7x
topology: tpu7x:2x2x1
jax: 0.10.0
libtpu: 0.0.40
codegen_flags: <defaults>
</compile_context>

<pallas_src>
import functools

import jax
import jax.numpy as jnp
from jax.experimental import pallas as pl
from jax.experimental.pallas import tpu as pltpu

_MIB = 1 << 20


def _physical_vmem_bytes():
    try:
        info = pltpu.get_tpu_info()
        return int(getattr(info, "vmem_capacity_bytes", 64 * _MIB))
    except Exception:
        return 64 * _MIB  # conservative fallback: v7x per-TensorCore VMEM


# Scoped-VMEM ceiling: ~80% of physical and never closer than 8 MiB to it, so
# Mosaic keeps headroom for internal scratch / semaphores / double-buffering.
_PHYS_VMEM = _physical_vmem_bytes()
_VMEM_CAP = max(16 * _MIB, min(int(0.8 * _PHYS_VMEM), _PHYS_VMEM - 8 * _MIB))


def _vmem_limit(n_bytes):
    return int(min(_VMEM_CAP, max(16 * _MIB, n_bytes + 2 * _MIB)))


def _pick_batch_tile(b, slab_bytes, budget_bytes):
    """Largest divisor of b such that one (TB, C, HWp) block stays under the
    budget, while keeping >= 2 grid steps whenever b >= 2 (pipeline overlap and
    both v7x TensorCores get work)."""
    best = 1
    for tb in range(1, b + 1):
        if b % tb:
            continue
        if tb * slab_bytes > budget_bytes:
            break
        if b >= 2 and (b // tb) < 2:
            continue
        best = tb
    return best


def _pick_hw_tile(hw_p, c, itemsize, budget_bytes, max_hw_tile=None):
    """Largest multiple of 128 that divides hw_p (already 128-aligned) while a
    (C, tile) block stays under the budget.  128 always divides hw_p, so this
    never falls back to the full spatial extent."""
    # TODO(synk): very large C (e.g. >8K channels) would also need channel
    # tiling to keep a (C, 128) block inside the budget.
    budget_elems = max(128, budget_bytes // max(1, c * itemsize))
    cap = min(hw_p, budget_elems, max_hw_tile if max_hw_tile else hw_p)
    cap = max(128, cap - cap % 128)
    for t in range(cap, 127, -128):
        if hw_p % t == 0:
            return t
    return 128  # unreachable: 128 divides hw_p


# --------------------------------------------------------------------------- #
# Fused path: TB batch elements per grid step.
# --------------------------------------------------------------------------- #
def _se_fused_kernel(x_ref, w1_ref, w2_ref, o_ref, *, inv_hw):
    # x_ref: (TB, C, HWp) native dtype; w1_ref: (C, R) f32; w2_ref: (R, C) f32.
    # Squeeze: lane-axis (spatial) mean, f32 accumulate; padded lanes are zero,
    # so dividing by the real H*W keeps the mean exact.
    pooled = jnp.sum(x_ref[...].astype(jnp.float32), axis=-1) * inv_hw      # (TB, C)
    # Excitation: Linear -> Swish -> Linear -> Sigmoid (tiny padded MXU dots,
    # amortized over the TB-batched block).
    h = jnp.dot(pooled, w1_ref[...], preferred_element_type=jnp.float32)    # (TB, R)
    h = h * jax.nn.sigmoid(h)                                               # Swish
    gate = jax.nn.sigmoid(
        jnp.dot(h, w2_ref[...], preferred_element_type=jnp.float32))        # (TB, C)
    # Scale in the native dtype (bf16-native on v6e/v7x; Mosaic expands on
    # v5e).  Re-read x_ref here rather than keeping the whole block live in
    # vregs across the MLP.  The tiny (TB, C) lane->sublane relayout of the
    # gate is amortized over the TB-batched block.
    o_ref[...] = x_ref[...] * gate.astype(o_ref.dtype)[:, :, None]


# --------------------------------------------------------------------------- #
# Two-pass path: pooling kernel + JAX MLP + scale kernel.
# --------------------------------------------------------------------------- #
def _pool_sum_kernel(x_ref, sum_ref):
    # Grid = (B, n_hw_chunks); the HW-chunk axis is the reduction axis (last,
    # 'arbitrary'); the (1, 1, C) f32 output block is the accumulator.
    @pl.when(pl.program_id(1) == 0)
    def _():
        sum_ref[...] = jnp.zeros_like(sum_ref)

    # TODO(synk): on v5e a ones-vector MXU dot would offload this reduce from
    # the VPU/XLU (no bf16 VALU there); kept as a lane reduce for simplicity.
    part = jnp.sum(x_ref[...].astype(jnp.float32), axis=-1)                 # (1, C)
    sum_ref[...] += part[:, None, :]                                        # (1, 1, C)


def _scale_kernel(x_ref, g_ref, o_ref):
    # x_ref: (1, C, hw_tile); g_ref: (1, C, 1), both in the native dtype.
    o_ref[...] = x_ref[...] * g_ref[...]


# --------------------------------------------------------------------------- #
# Wrapper
# --------------------------------------------------------------------------- #
def squeeze_excitation(x_nchw, w_fc1, w_fc2, *, force_two_pass=False,
                       max_hw_tile=None):
    """x_nchw: (B, C, H, W); w_fc1: (R, C); w_fc2: (C, R). Returns (B, C, H, W)
    in the input dtype."""
    b, c, h, w = x_nchw.shape
    r = w_fc1.shape[0]
    hw = h * w
    hw_p = ((hw + 127) // 128) * 128          # lane-dense padded spatial extent

    x_flat = x_nchw.reshape(b, c, hw)         # keep native dtype
    if hw_p != hw:
        # Zero-pad the spatial axis to a multiple of 128: unmasked vector
        # stores, legal 128-aligned tiles, and the pooled mean stays exact.
        x_flat = jnp.pad(x_flat, ((0, 0), (0, 0), (0, hw_p - hw)))
    itemsize = x_flat.dtype.itemsize
    slab_bytes = c * hw_p * itemsize          # one batch element's (C, HWp)
    weight_bytes = 2 * c * r * 4

    # Fused is ~2x HBM traffic (read + write once) vs ~3x for two-pass (x read
    # twice): take it whenever even an un-batched block double-buffers
    # comfortably inside the generation-aware scoped-VMEM cap.
    use_fused = (not force_two_pass) and (
        4 * slab_bytes + weight_bytes <= _VMEM_CAP - 4 * _MIB)

    if use_fused:
        tb = _pick_batch_tile(b, slab_bytes, budget_bytes=4 * _MIB)
        block_bytes = tb * slab_bytes
        w1 = jnp.asarray(w_fc1, jnp.float32).T                              # (C, R)
        w2 = jnp.asarray(w_fc2, jnp.float32).T                              # (R, C)
        cost = pl.CostEstimate(
            flops=int(2 * b * c * hw_p + 4 * b * c * r),
            transcendentals=int(b * (c + 2 * r)),
            bytes_accessed=int(2 * b * c * hw_p * itemsize + weight_bytes))
        out_flat = pl.pallas_call(
            functools.partial(_se_fused_kernel, inv_hw=1.0 / hw),
            out_shape=jax.ShapeDtypeStruct((b, c, hw_p), x_flat.dtype),
            grid=(b // tb,),
            in_specs=[
                pl.BlockSpec((tb, c, hw_p), lambda i: (i, 0, 0)),
                pl.BlockSpec((c, r), lambda i: (0, 0)),
                pl.BlockSpec((r, c), lambda i: (0, 0)),
            ],
            out_specs=pl.BlockSpec((tb, c, hw_p), lambda i: (i, 0, 0)),
            compiler_params=pltpu.CompilerParams(
                dimension_semantics=("parallel",),
                vmem_limit_bytes=_vmem_limit(4 * block_bytes + weight_bytes)),
            cost_estimate=cost,
        )(x_flat, w1, w2)
        return out_flat[:, :, :hw].reshape(b, c, h, w)

    # ---------------- two-pass path ---------------- #
    hw_budget = max(2 * _MIB, min(16 * _MIB, _VMEM_CAP // 8))
    hw_tile = _pick_hw_tile(hw_p, c, itemsize, hw_budget, max_hw_tile)
    n_hw = hw_p // hw_tile
    block_bytes = c * hw_tile * itemsize

    # Pass 1: pooled sums (B, 1, C) in f32.
    pool_cost = pl.CostEstimate(
        flops=int(b * c * hw_p), transcendentals=0,
        bytes_accessed=int(b * c * hw_p * itemsize + b * c * 4))
    sums = pl.pallas_call(
        _pool_sum_kernel,
        out_shape=jax.ShapeDtypeStruct((b, 1, c), jnp.float32),
        grid=(b, n_hw),
        in_specs=[pl.BlockSpec((1, c, hw_tile), lambda i, j: (i, 0, j))],
        out_specs=pl.BlockSpec((1, 1, c), lambda i, j: (i, 0, 0)),
        compiler_params=pltpu.CompilerParams(
            dimension_semantics=("parallel", "arbitrary"),
            vmem_limit_bytes=_vmem_limit(2 * block_bytes)),
        cost_estimate=pool_cost,
    )(x_flat)

    # Excitation MLP in plain JAX: ~B*C*R flops, negligible vs. HBM traffic.
    pooled = sums.reshape(b, c) * (1.0 / hw)
    hvec = pooled @ jnp.asarray(w_fc1, jnp.float32).T                       # (B, R)
    hvec = hvec * jax.nn.sigmoid(hvec)                                      # Swish
    gate = jax.nn.sigmoid(hvec @ jnp.asarray(w_fc2, jnp.float32).T)         # (B, C)
    gate = gate.astype(x_flat.dtype).reshape(b, c, 1)

    # Pass 2: gated scale, pipelined over (B, HW-chunks).
    scale_cost = pl.CostEstimate(
        flops=int(b * c * hw_p), transcendentals=0,
        bytes_accessed=int(2 * b * c * hw_p * itemsize + b * c * itemsize))
    out_flat = pl.pallas_call(
        _scale_kernel,
        out_shape=jax.ShapeDtypeStruct((b, c, hw_p), x_flat.dtype),
        grid=(b, n_hw),
        in_specs=[
            pl.BlockSpec((1, c, hw_tile), lambda i, j: (i, 0, j)),
            pl.BlockSpec((1, c, 1), lambda i, j: (i, 0, 0)),
        ],
        out_specs=pl.BlockSpec((1, c, hw_tile), lambda i, j: (i, 0, j)),
        compiler_params=pltpu.CompilerParams(
            dimension_semantics=("parallel", "parallel"),
            vmem_limit_bytes=_vmem_limit(4 * block_bytes + b * c * itemsize)),
        cost_estimate=scale_cost,
    )(x_flat, gate)

    return out_flat[:, :, :hw].reshape(b, c, h, w)


def _reference(x_nchw, w_fc1, w_fc2):
    # Pure-JAX reference matching the PyTorch module semantics (f32 result).
    xf = x_nchw.astype(jnp.float32)
    y = jnp.mean(xf, axis=(2, 3))                                           # (B, C)
    y = y @ jnp.asarray(w_fc1, jnp.float32).T                               # Linear C->R
    y = y * jax.nn.sigmoid(y)                                               # Swish
    y = jax.nn.sigmoid(y @ jnp.asarray(w_fc2, jnp.float32).T)               # Linear R->C + Sigmoid
    return xf * y[:, :, None, None]


if __name__ == "__main__":
    key = jax.random.PRNGKey(0)
    B, C, H, W = 2, 32, 16, 16
    R = max(1, C // 16)                            # reduction = channel // 16

    kx, k1, k2 = jax.random.split(key, 3)
    x = jax.random.normal(kx, (B, C, H, W), dtype=jnp.float32)

    # kaiming_normal_(mode='fan_out', nonlinearity='relu'): std = sqrt(2/fan_out)
    w_fc1 = jax.random.normal(k1, (R, C), dtype=jnp.float32) * jnp.sqrt(2.0 / R)
    w_fc2 = jax.random.normal(k2, (C, R), dtype=jnp.float32) * jnp.sqrt(2.0 / C)

    ref = _reference(x, w_fc1, w_fc2)

    # Path 1: fused kernel (auto-selected at this small shape), B=2 -> TB=1,
    # two parallel grid steps.
    out_fused = jax.block_until_ready(squeeze_excitation(x, w_fc1, w_fc2))
    assert out_fused.shape == (B, C, H, W)
    assert out_fused.dtype == x.dtype
    assert jnp.allclose(out_fused, ref, atol=2e-3, rtol=2e-3), "fused path mismatch"

    # Path 2: fused kernel with batch tiling exercised (B=4 -> TB=2).
    x4 = jax.random.normal(k1, (4, C, H, W), dtype=jnp.float32)
    ref4 = _reference(x4, w_fc1, w_fc2)
    out4 = jax.block_until_ready(squeeze_excitation(x4, w_fc1, w_fc2))
    assert jnp.allclose(out4, ref4, atol=2e-3, rtol=2e-3), "batched fused mismatch"

    # Path 3: two-pass (pool -> JAX MLP -> scale), forced spatial chunking.
    out_2p = jax.block_until_ready(
        squeeze_excitation(x, w_fc1, w_fc2, force_two_pass=True, max_hw_tile=128))
    assert jnp.allclose(out_2p, ref, atol=1e-5, rtol=1e-5), "two-pass path mismatch"

    # Path 4: non-128-aligned spatial map (7x7 -> padded to 128 lanes).
    x7 = jax.random.normal(k2, (B, C, 7, 7), dtype=jnp.float32)
    ref7 = _reference(x7, w_fc1, w_fc2)
    out7 = jax.block_until_ready(squeeze_excitation(x7, w_fc1, w_fc2))
    assert jnp.allclose(out7, ref7, atol=2e-3, rtol=2e-3), "padded fused mismatch"
    out7_2p = jax.block_until_ready(
        squeeze_excitation(x7, w_fc1, w_fc2, force_two_pass=True))
    assert jnp.allclose(out7_2p, ref7, atol=1e-5, rtol=1e-5), "padded two-pass mismatch"

    # Path 5: native-dtype (bf16) I/O through the fused kernel (bf16 scale mul).
    x_bf16 = x.astype(jnp.bfloat16)
    out_bf16 = jax.block_until_ready(squeeze_excitation(x_bf16, w_fc1, w_fc2))
    assert out_bf16.dtype == jnp.bfloat16
    ref_bf16 = _reference(x_bf16, w_fc1, w_fc2)
    assert jnp.allclose(out_bf16.astype(jnp.float32), ref_bf16,
                        atol=5e-2, rtol=5e-2), "bf16 path mismatch"

    print("KERNEL_OK")
</pallas_src>

<mosaic_0001>
module attributes {stable_mosaic.version = 11 : i64} {
  func.func @_se_fused_kernel(%arg0: i32, %arg1: memref<1x32x256xf32, #tpu.memory_space<vmem>>, %arg2: memref<32x2xf32, #tpu.memory_space<vmem>>, %arg3: memref<2x32xf32, #tpu.memory_space<vmem>>, %arg4: memref<1x32x256xf32, #tpu.memory_space<vmem>>) attributes {dimension_semantics = [#tpu.dimension_semantics<parallel>], iteration_bounds = array<i64: 2>, scalar_prefetch = 0 : i64, scratch_operands = 0 : i64, tpu.core_type = #tpu.core_type<tc>, window_params = [{transform_indices = @transform_0, window_bounds = array<i64: 1, 32, 256>}, {pipeline_mode = #tpu.pipeline_mode<synchronous>, transform_indices = @transform_1, window_bounds = array<i64: 32, 2>}, {pipeline_mode = #tpu.pipeline_mode<synchronous>, transform_indices = @transform_2, window_bounds = array<i64: 2, 32>}, {transform_indices = @transform_3, window_bounds = array<i64: 1, 32, 256>}]} {
    %c0 = arith.constant 0 : index
    %c0_0 = arith.constant 0 : index
    %c0_1 = arith.constant 0 : index
    %0 = vector.load %arg1[%c0, %c0_0, %c0_1] : memref<1x32x256xf32, #tpu.memory_space<vmem>>, vector<1x32x256xf32>
    %cst = arith.constant dense<0.000000e+00> : vector<1x32xf32>
    %1 = vector.multi_reduction <add>, %0, %cst [2] : vector<1x32x256xf32> to vector<1x32xf32>
    %cst_2 = arith.constant 3.906250e-03 : f32
    %2 = vector.broadcast %cst_2 : f32 to vector<1x32xf32>
    %3 = arith.mulf %1, %2 : vector<1x32xf32>
    %c0_3 = arith.constant 0 : index
    %c0_4 = arith.constant 0 : index
    %4 = vector.load %arg2[%c0_3, %c0_4] : memref<32x2xf32, #tpu.memory_space<vmem>>, vector<32x2xf32>
    %cst_5 = arith.constant dense<0.000000e+00> : vector<1x2xf32>
    %5 = tpu.matmul %3, %4, %cst_5 {dimension_numbers = #tpu.dot_dimension_numbers<[1], [0], [0], [1], [0, 0, 1, 1], [], []>} : vector<1x32xf32>, vector<32x2xf32>, vector<1x2xf32> -> vector<1x2xf32>
    %6 = arith.negf %5 : vector<1x2xf32>
    %7 = math.exp %6 : vector<1x2xf32>
    %cst_6 = arith.constant 1.000000e+00 : f32
    %8 = vector.broadcast %cst_6 : f32 to vector<1x2xf32>
    %9 = arith.addf %8, %7 : vector<1x2xf32>
    %10 = arith.divf %8, %9 : vector<1x2xf32>
    %11 = arith.mulf %5, %10 : vector<1x2xf32>
    %c0_7 = arith.constant 0 : index
    %c0_8 = arith.constant 0 : index
    %12 = vector.load %arg3[%c0_7, %c0_8] : memref<2x32xf32, #tpu.memory_space<vmem>>, vector<2x32xf32>
    %cst_9 = arith.constant dense<0.000000e+00> : vector<1x32xf32>
    %13 = tpu.matmul %11, %12, %cst_9 {dimension_numbers = #tpu.dot_dimension_numbers<[1], [0], [0], [1], [0, 0, 1, 1], [], []>} : vector<1x2xf32>, vector<2x32xf32>, vector<1x32xf32> -> vector<1x32xf32>
    %14 = arith.negf %13 : vector<1x32xf32>
    %15 = math.exp %14 : vector<1x32xf32>
    %cst_10 = arith.constant 1.000000e+00 : f32
    %16 = vector.broadcast %cst_10 : f32 to vector<1x32xf32>
    %17 = arith.addf %16, %15 : vector<1x32xf32>
    %18 = arith.divf %16, %17 : vector<1x32xf32>
    %c0_11 = arith.constant 0 : index
    %c0_12 = arith.constant 0 : index
    %c0_13 = arith.constant 0 : index
    %19 = vector.load %arg1[%c0_11, %c0_12, %c0_13] : memref<1x32x256xf32, #tpu.memory_space<vmem>>, vector<1x32x256xf32>
    %20 = vector.shape_cast %18 : vector<1x32xf32> to vector<1x32x1xf32>
    %21 = vector.broadcast %20 : vector<1x32x1xf32> to vector<1x32x256xf32>
    %22 = arith.mulf %19, %21 : vector<1x32x256xf32>
    %c0_14 = arith.constant 0 : index
    %c0_15 = arith.constant 0 : index
    %c0_16 = arith.constant 0 : index
    %23 = vector.load %arg4[%c0_14, %c0_15, %c0_16] : memref<1x32x256xf32, #tpu.memory_space<vmem>>, vector<1x32x256xf32>
    tpu.vector_store %arg4[%c0_14, %c0_15, %c0_16], %22 {strides = array<i32>} : memref<1x32x256xf32, #tpu.memory_space<vmem>>, vector<1x32x256xf32>,
    return
  }
  func.func @transform_0(%arg0: i32) -> (i32, i32, i32) {
    %c0_i32 = arith.constant 0 : i32
    %c0_i32_0 = arith.constant 0 : i32
    %c0_i32_1 = arith.constant 0 : i32
    return %arg0, %c0_i32, %c0_i32_0 : i32, i32, i32
  }
  func.func @transform_1(%arg0: i32) -> (i32, i32) {
    %c0_i32 = arith.constant 0 : i32
    %c0_i32_0 = arith.constant 0 : i32
    %c0_i32_1 = arith.constant 0 : i32
    return %c0_i32, %c0_i32_0 : i32, i32
  }
  func.func @transform_2(%arg0: i32) -> (i32, i32) {
    %c0_i32 = arith.constant 0 : i32
    %c0_i32_0 = arith.constant 0 : i32
    %c0_i32_1 = arith.constant 0 : i32
    return %c0_i32, %c0_i32_0 : i32, i32
  }
  func.func @transform_3(%arg0: i32) -> (i32, i32, i32) {
    %c0_i32 = arith.constant 0 : i32
    %c0_i32_0 = arith.constant 0 : i32
    %c0_i32_1 = arith.constant 0 : i32
    return %arg0, %c0_i32, %c0_i32_0 : i32, i32, i32
  }
}

</mosaic_0001>

<bundles_post_ra>
// kernel: tpu_custom_call.1
= control target key start
LH: loop header
LB: loop body
LE: loop exit
PB: predicated region body
PF: predicated region fallthrough
CT: control target
= control target key end

     0   :  { %8 = vsyncpa [#allocation3], 0  ;;  %s986_s0 = inlined_call_operand.hbm [shape: f32[2,32,256], index: 0, kind: input, shape index: {}]   ;;  %s987_s1 = inlined_call_operand.vmem [shape: f32[32,2], index: 1, kind: input, shape index: {}]   ;;  %s988_s2 = inlined_call_operand.vmem [shape: f32[2,32], index: 2, kind: input, shape index: {}]   ;;  %s989_s3 = inlined_call_operand.hbm [shape: f32[2,32,256], index: 3, kind: output, shape index: {}]  }
   0x1   :  { %10 = vsyncpa [#allocation3 + $0x1], 0 }
   0x2   :  { %11 = vsyncpa [#allocation4], 0 }
   0x3   :  { %13 = vsyncpa [#allocation4 + $0x1], 0  ;;  %s773_s12 = smov 0   ;;  %s775_s13 = smov 0  }
   0x4   :  { %s777_s14 = smov 0   ;;  %s779_s15 = smov 0  }
   0x5 LB: > { %s794_s16 = sadd.s32 4294967295, %s742_s15   ;;  %s535_s17 = sadd.s32 4294967294, %s742_s15   ;;  %s742_s15 = sphi %s779_s15, %s1002_s15   ;;  %s738_s14 = sphi %s777_s14, %s1001_s14   ;;  %s734_s13 = sphi %s775_s13, %s1000_s13   ;;  %s730_s12 = sphi %s773_s12, %s999_s12  }
   0x6   : > { %s798_s18 = sadd.s32 1, %s742_s15   ;;  %s26_s19 = sadd.s32 1, %s738_s14 }
   0x7   : > { %s23_s20 = ssub.s32 %s742_s15, %s798_s18  ;;  %p33_p0 = scmp.ne.s32.totalorder %s738_s14, %s734_s13 }
   0x8   : > { %p24_p1 = scmp.eq.s32.totalorder %s23_s20, 0  ;;  %p34_p2 = scmp.eq.s32.totalorder %s742_s15, 0 }
   0x9   : > { %p39_p3 = scmp.ne.s32.totalorder %s734_s13, %s730_s12  ;;  %p40_p4 = scmp.eq.s32.totalorder %s794_s16, 0 }
   0xa   : > { %s810_s21 = scalar_select %p24_p1, %s738_s14, %s26_s19  }
   0xb   : > { %p812_p5 = por %p34_p2, %p33_p0  ;;  %p816_p6 = por %p40_p4, %p39_p3 }
   0xc   : > { %p105_p7 = scmp.eq.s32.totalorder %s794_s16, 1  ;;  %p111_p8 = scmp.eq.s32.totalorder %s535_s17, 1 }
   0xd   : > { %p597_p10 = scmp.lt.s32.totalorder %s742_s15, 2  ;;  %s137_s26 = sand.u32 1, %s738_s14  }
   0xe   : > { %p823_p11 = por %p105_p7, %p33_p0  ;;  %p827_p12 = por %p111_p8, %p39_p3 }
   0xf   : > { %s554_s27 = sshll.u32 %s742_s15, 10  ;;  %s538_s28 = sshll.u32 %s137_s26, 6 }
  0x10   : > { %s993_s24 = scalar_select %p823_p11, 1, 0 }
  0x11   : > { %s994_s25 = scalar_select %p827_p12, 1, 0 }
  0x12   : > { %s836_s4 = scalar_lea.hbm %s986_s0, %s554_s27  ;;  %s141_s5 = scalar_lea.vmem [#allocation2], %s538_s28 }
  0x13   : > { %s148_s6 = sshll.u32 %s141_s5, 4  ;;  %p840_p13 = pnand %p597_p10, %p812_p5  ;;  %s844_s6 = int_to_ptr.vmem [resolvable:$true] %s148_s6 }
  0x14   : > { %s846_s8 = scalar_lea.sflag [#allocation3], %s137_s26  ;;  %s646_s9 = scalar_lea.hbm %s836_s4, 1024 }
  0x15   : > { %p647_p0 = scmp.ne.s32.totalorder %s836_s4, %s646_s9  ;;  %p648_p1 = pneg %p840_p13 }
  0x16   : > { %s651_s17 = scalar_lea.hbm %s986_s0, 2048  ;;  %p652_p4 = scmp.lt.u32.totalorder %s836_s4, %s986_s0 }
  0x17   : > { %p649_p2 = pnand %p648_p1, %p647_p0  ;;  %p653_p5 = scmp.lt.u32.totalorder %s651_s17, %s646_s9 }
  0x18   : > { %p655_p8 = scmp.lt.u32.totalorder %s646_s9, %s836_s4 }
  0x19   : > { %p650_p3 = pneg %p649_p2  ;;  %p654_p7 = por %p653_p5, %p652_p4 }
  0x1b   : > { %p656_p10 = por %p655_p8, %p654_p7 }
  0x1d   : > { %p657_p9 = pnand %p656_p10, %p650_p3 }
  0x1f   : > { %660 = shalt.err (!%p657_p9)
}
  0x20   : > { %s661_s22 = scalar_lea.vmem %s844_s6, 1024  ;;  %s744_s26 = smov [#allocation2]  }
  0x21   : > { %p662_p0 = scmp.ne.s32.totalorder %s844_s6, %s661_s22  ;;  %s666_s27 = sshll.u32 %s744_s26, 4  ;;  %s667_s27 = int_to_ptr.vmem [resolvable:$false] %s666_s27 }
  0x22   : > { %s668_s28 = scalar_lea.vmem %s667_s27, 2048  ;;  %p669_p11 = scmp.lt.s32.totalorder %s844_s6, %s667_s27 }
  0x23   : > { %p664_p2 = pnand %p662_p0, %p648_p1  ;;  %p670_p4 = scmp.lt.s32.totalorder %s668_s28, %s661_s22 }
  0x25   : > { %p665_p12 = pneg %p664_p2  ;;  %p671_p5 = por %p670_p4, %p669_p11 }
  0x27   : > { %p672_p7 = pnand %p671_p5, %p665_p12 }
  0x29   : > { %675 = shalt.err (!%p672_p7)
}
  0x2a   : > { %s745_s29 = smov 256   ;;  %s746_s30 = smov 16  }
  0x2b   : > { %592 = dma.hbm_to_vmem [thread:$0]  (!%p840_p13), %s836_s4, 1024, %s844_s6, %s846_s8, %s745_s29, %s745_s29, %s746_s30  }
  0x2c   : > { %p541_p9 = scmp.ge.s32.totalorder %s742_s15, 1  ;;  %p156_p1 = scmp.lt.s32.totalorder %s742_s15, 3 }
  0x2e   : > { %p157_p3 = pnand %p541_p9, %p156_p1 }
  0x2f   : > { %s877_s5 = sand.u32 (!%p157_p3), 1, %s734_s13  }
  0x30   : > { %160 = sbr.rel (%p157_p3) target bundleno = 832 (0x340), region = 32  ;;  %s542_s9 = sshll.u32 (!%p157_p3), %s877_s5, 6 }
  0x31   : > { %s163_s10 = scalar_lea.sflag (!%p157_p3), [#allocation3], %s877_s5  ;;  %s166_s11 = scalar_lea.vmem (!%p157_p3), [#allocation2], %s542_s9 }
  0x37   : > { %721 = dma.done.wait (%p816_p6), %s163_s10, 1024  }
  0x38   : > { %723 = vsyncadd (%p816_p6), %s163_s10, 4294966272  ;;  %v887_v0 = vld [vmem:[%s166_s11] sm:$0xff]  ;;  %v889_v1 = vld [vmem:[%s166_s11 + $0x8] sm:$0xff]  ;;  %v747_v15 = vmov 0.0|0.0   ;;  %vm748_vm0 = vmmov 0   ;;  %v749_v19 = vmov 0.0   ;;  %v221_v20 = vlaneseq }
  0x39   : > { %v891_v2 = vld [vmem:[%s166_s11 + $0x20] sm:$0xff]  ;;  %v197_v3 = vadd.f32 %v889_v1, %v887_v0  ;;  %v895_v4 = vld [vmem:[%s166_s11 + $0x28] sm:$0xff]  ;;  %v897_v5 = vld [vmem:[%s166_s11 + $0x10] sm:$0xff]  ;;  %579 = vmatprep.subr.bf16.mxu0 %v747_v15  ;;  %571 = vmatprep.mubr.msk.f32.mxu0 %vm748_vm0, %v749_v19  ;;  %vm232_vm1 = vcmask 130112   ;;  %vm239_vm2 = vcmask 195712   ;;  %vm246_vm3 = vcmask 261312  }
  0x3a   : > { %v899_v6 = vld [vmem:[%s166_s11 + $0x18] sm:$0xff]  ;;  %v203_v7 = vadd.f32 %v895_v4, %v891_v2  ;;  %v903_v8 = vld [vmem:[%s166_s11 + $0x30] sm:$0xff]  ;;  %v213_v12 = vld [vmem:[%s987_s1] sm:$0xff]  ;;  %574 = vmatprep.subr.mxu1 %v749_v19  ;;  %576 = vmatprep.mubr.msk.f32.mxu1 %vm748_vm0, %v749_v19  ;;  %v222_v21 = vand.u32 127, %v221_v20  ;;  %v224_v22 = vshrl.u32 %v221_v20, 7  ;;  %vm248_vm4 = vcmask 261120  }
  0x3b   : > { %v905_v9 = vld [vmem:[%s166_s11 + $0x38] sm:$0xff]  ;;  %198 = vadd.xlane.f32.xlu0 %v197_v3  ;;  %v200_v10 = vadd.f32 %v899_v6, %v897_v5  ;;  %v214_v13 = vld [vmem:[%s987_s1 + $0x8] sm:$0xff]  ;;  %v215_v16 = vld [vmem:[%s987_s1 + $0x10] sm:$0xff]  ;;  %vm333_vm5 = vcmask 1041408   ;;  %vm329_vm6 = vcmask 15360   ;;  %s188_s27 = scalar_lea.vmem [#allocation5], %s542_s9 }
  0x3c   : > { %204 = vadd.xlane.f32.xlu1 %v203_v7  ;;  %v206_v11 = vadd.f32 %v905_v9, %v903_v8  ;;  %v580_v14 = vpack.c.bf16 %v214_v13, %v213_v12  ;;  %v216_v17 = vld [vmem:[%s987_s1 + $0x18] sm:$0xff]  ;;  %v227_v23 = vadd.s32 4294967288, %v222_v21  ;;  %v234_v25 = vadd.s32 4294967280, %v222_v21  ;;  %v328_v45 = vld [vmem:[%s988_s2] sm:$0x3]  ;;  %s462_s28 = sshll.u32 %s188_s27, 4  ;;  %s935_s28 = int_to_ptr.vmem [resolvable:$true] %s462_s28 }
  0x3d   : > { %v583_v18 = vpack.c.bf16 %v216_v17, %v215_v16  ;;  %v241_v26 = vadd.s32 4294967272, %v222_v21  ;;  %v225_v28 = vsub.s32 %v222_v21, %v224_v22  ;;  %575 = vmatpush3.msk.msra.mxu1 %vm333_vm5, %v328_v45  ;;  %v415_v58 = vsub.s32 0, %v224_v22  ;;  %s555_s29 = sshll.u32 %s794_s16, 10  ;;  %s449_s16 = scalar_lea.sflag [#allocation4], %s877_s5 }
  0x3e   : > { %581 = vmatpush3.bf16.msra.mxu0 %v580_v14  ;;  %v230_v30 = vsub.s32 %v227_v23, %v224_v22  ;;  %v237_v31 = vsub.s32 %v234_v25, %v224_v22  ;;  %s940_s10 = scalar_lea.hbm %s989_s3, %s555_s29  ;;  %s676_s11 = scalar_lea.vmem %s935_s28, 1024 }
  0x3f   : > { %201 = vadd.xlane.f32.xlu0 %v200_v10  ;;  %582 = vmatprep.subr.bf16.mxu0 %v747_v15  ;;  %v244_v34 = vsub.s32 %v241_v26, %v224_v22  ;;  %p677_p6 = scmp.ne.s32.totalorder %s935_s28, %s676_s11  ;;  %p996_p11 = scmp.ne.s32.totalorder %s993_s24, 0 }
  0x40   : > { %207 = vadd.xlane.f32.xlu1 %v206_v11  ;;  %s750_s23 = smov [#allocation5]  }
  0x41   : > { %p678_p12 = pnand %p677_p6, %p996_p11  ;;  %s680_s4 = sshll.u32 %s750_s23, 4  ;;  %s681_s4 = int_to_ptr.vmem [resolvable:$false] %s680_s4 }
  0x42   : > { %584 = vmatpush3.bf16.msra.mxu0 %v583_v18  ;;  %s682_s6 = scalar_lea.vmem %s681_s4, 2048  ;;  %p683_p8 = scmp.lt.s32.totalorder %s935_s28, %s681_s4 }
  0x43   : > { %p679_p13 = pneg %p678_p12  ;;  %p684_p10 = scmp.lt.s32.totalorder %s682_s6, %s676_s11 }
  0x45   : > { %p685_p0 = por %p684_p10, %p683_p8 }
  0x47   : > { %p686_p2 = pnand %p685_p0, %p679_p13 }
  0xc8   : > { %v199_v24 = vpop.xlane.xlu0 %198 }
  0xc9   : > { %v205_v27 = vpop.xlane.xlu1 %204  ;;  %v209_v29 = vmul.f32 0.00390625, %v199_v24 }
  0xca   : > { %v211_v32 = vmul.f32 0.00390625, %v205_v27 }
  0xcb   : > { %v226_v38 = vrot.slane %v209_v29, %v225_v28 }
  0xcc   : > { %v202_v33 = vpop.xlane.xlu0 %201  ;;  %v238_v40 = vrot.slane %v211_v32, %v237_v31 }
  0xcd   : > { %v210_v35 = vmul.f32 0.00390625, %v202_v33  ;;  %v208_v36 = vpop.xlane.xlu1 %207 }
  0xce   : > { %v212_v37 = vmul.f32 0.00390625, %v208_v36 }
  0xcf   : > { %v231_v39 = vrot.slane %v210_v35, %v230_v30 }
  0xd0   : > { %v245_v41 = vrot.slane %v212_v37, %v244_v34 }
  0xd1   : > { %v233_v42 = vsel %vm232_vm1, %v231_v39, %v226_v38 }
  0xd2   : > { %v240_v43 = vsel %vm239_vm2, %v238_v40, %v233_v42 }
  0xd3   : > { %v247_v44 = vsel %vm246_vm3, %v245_v41, %v240_v43 }
  0xd4   : > { %572 = vmatmul.mubr.msk.f32.vlgmr.msra.gmra.mrb[0].mxu0 %vm248_vm4, %v247_v44 }
 0x1a7   : > { %v317_v46 = vpop.f32.mrb[0].mxu0 }
 0x1a8   : > { %v545_v47 = vmul.f32 -1.442695, %v317_v46  ;;  %v573_v48 = vpop.f32.mrb[1].mxu0 }
 0x1aa   : > { %638 = vpow2.f32 %v545_v47 }
 0x1b4   : > { %v639_v49 = vpop.eup %638 }
 0x1b5   : > { %v324_v50 = vadd.f32 1.0, %v639_v49 }
 0x1b7   : > { %640 = vrcp.f32 %v324_v50 }
 0x1c1   : > { %v641_v51 = vpop.eup %640 }
 0x1c2   : > { %v327_v52 = vmul.f32 %v641_v51, %v317_v46 }
 0x1c4   : > { %577 = vmatmul.mubr.msk.f32.vlgmr.msra.gmra.mrb[0].mxu1 %vm329_vm6, %v327_v52 }
 0x297   : > { %v403_v53 = vpop.f32.mrb[0].mxu1 }
 0x298   : > { %v548_v54 = vmul.f32 -1.442695, %v403_v53  ;;  %v578_v55 = vpop.f32.mrb[1].mxu1 }
 0x29a   : > { %642 = vpow2.f32 %v548_v54 }
 0x2a4   : > { %v643_v56 = vpop.eup %642 }
 0x2a5   : > { %v410_v57 = vadd.f32 1.0, %v643_v56 }
 0x2a7   : > { %644 = vrcp.f32 %v410_v57 }
 0x2b1   : > { %v645_v59 = vpop.eup %644 }
 0x2b2   : > { %v416_v60 = vrot.slane %v645_v59, %v415_v58 }
 0x2b4   : > { %422 = vbcast.lane.b32.xlu1 %v416_v60, 264  ;;  %418 = vbcast.lane.b32.xlu0 %v416_v60, 256 }
 0x2b8   : > { %426 = vbcast.lane.b32.xlu1 %v416_v60, 272 }
 0x2bc   : > { %430 = vbcast.lane.b32.xlu1 %v416_v60, 280 }
 0x326   : > { %v423_v61 = vpop.permute.xlu1 %422  ;;  %v419_v62 = vpop.permute.xlu0 %418 }
 0x327   : > { %v434_v63 = vmul.f32 %v423_v61, %v897_v5  ;;  %v435_v3 = vmul.f32 %v423_v61, %v899_v6  ;;  %v432_v7 = vmul.f32 %v419_v62, %v887_v0  ;;  %v433_v10 = vmul.f32 %v419_v62, %v889_v1 }
 0x329   : > { %442 = vst [vmem:[%s188_s27 + $0x10] sm:$0xff] %v434_v63  ;;  %443 = vst [vmem:[%s188_s27 + $0x18] sm:$0xff] %v435_v3 }
 0x32a   : > { %440 = vst [vmem:[%s188_s27] sm:$0xff] %v432_v7  ;;  %441 = vst [vmem:[%s188_s27 + $0x8] sm:$0xff] %v433_v10  ;;  %v427_v11 = vpop.permute.xlu1 %426 }
 0x32b   : > { %v436_v12 = vmul.f32 %v427_v11, %v891_v2  ;;  %v437_v5 = vmul.f32 %v427_v11, %v895_v4 }
 0x32d   : > { %444 = vst [vmem:[%s188_s27 + $0x20] sm:$0xff] %v436_v12  ;;  %445 = vst [vmem:[%s188_s27 + $0x28] sm:$0xff] %v437_v5 }
 0x32e   : > { %v431_v0 = vpop.permute.xlu1 %430 }
 0x32f   : > { %v438_v1 = vmul.f32 %v431_v0, %v903_v8  ;;  %v439_v2 = vmul.f32 %v431_v0, %v905_v9 }
 0x331   : > { %446 = vst [vmem:[%s188_s27 + $0x30] sm:$0xff] %v438_v1  ;;  %447 = vst [vmem:[%s188_s27 + $0x38] sm:$0xff] %v439_v2 }
 0x332   : > { %689 = shalt.err (!%p686_p2)
}
 0x333   : > { %s690_s7 = scalar_lea.hbm %s940_s10, 1024  ;;  %s694_s19 = scalar_lea.hbm %s989_s3, 2048 }
 0x334   : > { %p691_p4 = scmp.ne.s32.totalorder %s940_s10, %s690_s7  ;;  %p695_p9 = scmp.lt.u32.totalorder %s940_s10, %s989_s3 }
 0x335   : > { %p696_p1 = scmp.lt.u32.totalorder %s694_s19, %s690_s7  ;;  %p698_p6 = scmp.lt.u32.totalorder %s690_s7, %s940_s10 }
 0x336   : > { %p692_p5 = pnand %p691_p4, %p996_p11 }
 0x337   : > { %p697_p3 = por %p696_p1, %p695_p9 }
 0x338   : > { %p693_p7 = pneg %p692_p5 }
 0x339   : > { %p699_p12 = por %p698_p6, %p697_p3 }
 0x33b   : > { %p700_p13 = pnand %p699_p12, %p693_p7 }
 0x33d   : > { %703 = shalt.err (!%p700_p13)
}
 0x33e   : > { %s751_s26 = smov 256   ;;  %s752_s27 = smov 16  }
 0x33f   : > { %587 = dma.vmem_to_hbm [thread:$0]  (%p996_p11), %s935_s28, 1024, %s940_s10, %s449_s16, %s751_s26, %s751_s26, %s752_s27  }
 0x340 PF: > { %s477_s29 = sand.u32 1, %s730_s12   ;;  %p997_p8 = scmp.ne.s32.totalorder %s994_s25, 0 }
 0x341   : > { %p998_p10 = scmp.ge.s32.totalorder %s742_s15, 2  ;;  %s478_s30 = scalar_lea.sflag [#allocation4], %s477_s29 }
 0x343   : > { %p594_p0 = pnand %p998_p10, %p997_p8 }
 0x345   : > { %725 = dma.done.wait (!%p594_p0), %s478_s30, 1024  }
 0x346   : > { %727 = vsyncadd (!%p594_p0), %s478_s30, 4294966272  ;;  %p16_p2 = scmp.ge.s32.totalorder %s798_s18, 4   ;;  %s999_s12 = smov %s734_s13 }
 0x347   : > { %s1000_s13 = smov %s738_s14  ;;  %s1001_s14 = smov %s810_s21 }
 0x348   : > { %s1002_s15 = smov %s798_s18  ;;  %18 = sbr.rel (!%p16_p2) target bundleno = 5 (0x5), region = 77 }
 0x34f   :  { %483 = vsyncpa [#allocation3], 1 }
 0x350   :  { %485 = vsyncpa [#allocation3 + $0x1], 1 }
 0x351   :  { %486 = vsyncpa [#allocation4], 1 }
 0x352   :  { %488 = vsyncpa [#allocation4 + $0x1], 1 }

</bundles_post_ra>
